<compile_context>
chip_gen: v7x
topology: tpu7x:2x2x1
jax: 0.10.0
libtpu: 0.0.40
codegen_flags: <defaults>
</compile_context>

<pallas_src>
import functools

import numpy as np
import jax
import jax.numpy as jnp
from jax import lax
from jax.experimental import pallas as pl
from jax.experimental.pallas import tpu as pltpu


def _msa_kernel(tok_ref, wq_ref, bq_ref, wk_ref, bk_ref, wv_ref, bv_ref,
                wl_ref, bl_ref, out_ref, *,
                num_heads, head_dim, seq_len, batch_block, approx_recip):
    H, D, S, Bt = num_heads, head_dim, seq_len, batch_block
    E = H * D
    cdt = tok_ref.dtype                       # compute dtype (bf16 or f32)
    inv_scale = 1.0 / float(D)                # reference divides by head_dim (no sqrt)
    nt_dims = (((1,), (1,)), ((), ()))        # contract last dim of both operands

    x = tok_ref[...]                          # (Bt*S, E), compute dtype

    # Head-fused projections: one wide matmul each (MXU N = E), f32 accumulation + f32 bias.
    q_all = jnp.dot(x, wq_ref[...], preferred_element_type=jnp.float32) + bq_ref[...]
    k_all = jnp.dot(x, wk_ref[...], preferred_element_type=jnp.float32) + bk_ref[...]
    v_all = jnp.dot(x, wv_ref[...], preferred_element_type=jnp.float32) + bv_ref[...]

    bl = bl_ref[...]                          # (1, E) f32

    for b in range(Bt):                       # static unroll (Bt is small)
        r0 = b * S
        acc = jnp.zeros((S, E), jnp.float32)
        for h in range(H):                    # static unroll (H is small)
            c0 = h * D
            q = q_all[r0:r0 + S, c0:c0 + D].astype(cdt)   # (S, D)
            k = k_all[r0:r0 + S, c0:c0 + D].astype(cdt)
            v = v_all[r0:r0 + S, c0:c0 + D].astype(cdt)

            # Q @ K^T without materializing a transpose of K.
            s = lax.dot_general(q, k, nt_dims, preferred_element_type=jnp.float32)
            s = s * inv_scale
            s = s - jnp.max(s, axis=-1, keepdims=True)    # stable softmax, f32
            p = jnp.exp(s)
            p = p * pl.reciprocal(jnp.sum(p, axis=-1, keepdims=True),
                                  approx=approx_recip)

            pv = jnp.dot(p.astype(cdt), v, preferred_element_type=jnp.float32)  # (S, D)

            # concat + final linear folded into a per-head accumulation:
            #   cat @ W_last^T == sum_h pv_h @ W_last^T[h*D:(h+1)*D, :]
            acc = acc + jnp.dot(pv.astype(cdt), wl_ref[h],
                                preferred_element_type=jnp.float32)

        # Lane-dense full-width (S, E) store.
        out_ref[r0:r0 + S, :] = (acc + bl).astype(out_ref.dtype)


def _pick_batch_block(B, S, max_rows=512):
    """Largest divisor of B whose row tile stays modest and sublane-aligned."""
    upper = min(B, max(1, max_rows // max(S, 1)))
    for bt in range(upper, 0, -1):
        if B % bt == 0 and (bt == B or (bt * S) % 8 == 0):
            return bt
    return 1


def _vmem_estimate_bytes(rows, S, E, H, D, cbytes):
    dbl = 2  # double buffering
    io = dbl * rows * E * (cbytes + 4)                       # tokens in + f32 out
    w = dbl * ((3 * E * E + H * D * E) * cbytes + 4 * E * 4)  # weights + biases
    work = rows * E * 4 * 4 + S * S * 4 * 3 + S * E * 4 * 2   # q/k/v, scores, acc
    return io + w + work


def msa_forward(tokens, wq, bq, wk, bk, wv, bv, w_last, b_last, *, num_heads,
                compute_dtype=jnp.bfloat16, batch_block=None):
    B, S, E = tokens.shape
    H = num_heads
    assert E % H == 0
    D = E // H
    assert wq.shape == (H, E, D) and w_last.shape == (E, E)

    cdt = compute_dtype
    is_bf16 = np.dtype(cdt) == np.dtype(jnp.bfloat16)

    # ---- host-side packing / pre-transposition (done once, outside the kernel) ----
    def pack_w(w):   # (H, E, D) -> (E, H*D), head h in columns [h*D:(h+1)*D]
        return jnp.transpose(w, (1, 0, 2)).reshape(E, H * D).astype(cdt)

    def pack_b(b):   # (H, 1, D) -> (1, H*D), kept in f32
        return jnp.transpose(b, (1, 0, 2)).reshape(1, H * D).astype(jnp.float32)

    wq_p, wk_p, wv_p = pack_w(wq), pack_w(wk), pack_w(wv)
    bq_p, bk_p, bv_p = pack_b(bq), pack_b(bk), pack_b(bv)
    wl_heads = jnp.transpose(w_last).reshape(H, D, E).astype(cdt)   # W_last^T split per head
    bl = b_last.reshape(1, E).astype(jnp.float32)

    tokens2d = tokens.reshape(B * S, E).astype(cdt)

    Bt = _pick_batch_block(B, S) if batch_block is None else batch_block
    assert B % Bt == 0
    rows = Bt * S
    grid = (B // Bt,)

    kernel = functools.partial(
        _msa_kernel, num_heads=H, head_dim=D, seq_len=S,
        batch_block=Bt, approx_recip=is_bf16)

    grid_spec = pltpu.PrefetchScalarGridSpec(
        num_scalar_prefetch=0,
        grid=grid,
        in_specs=[
            pl.BlockSpec((rows, E), lambda i: (i, 0)),      # tokens (flattened rows)
            pl.BlockSpec((E, E), lambda i: (0, 0)),         # Wq packed (resident)
            pl.BlockSpec((1, E), lambda i: (0, 0)),         # bq
            pl.BlockSpec((E, E), lambda i: (0, 0)),         # Wk packed
            pl.BlockSpec((1, E), lambda i: (0, 0)),         # bk
            pl.BlockSpec((E, E), lambda i: (0, 0)),         # Wv packed
            pl.BlockSpec((1, E), lambda i: (0, 0)),         # bv
            pl.BlockSpec((H, D, E), lambda i: (0, 0, 0)),   # W_last^T per head
            pl.BlockSpec((1, E), lambda i: (0, 0)),         # b_last
        ],
        out_specs=pl.BlockSpec((rows, E), lambda i: (i, 0)),
    )

    comp_kwargs = dict(dimension_semantics=("parallel",))
    est = _vmem_estimate_bytes(rows, S, E, H, D, 2 if is_bf16 else 4)
    if est > (16 << 20):   # only override when the conservative default would not fit
        comp_kwargs["vmem_limit_bytes"] = int(min(max(2 * est, 32 << 20), 64 << 20))

    out2d = pl.pallas_call(
        kernel,
        out_shape=jax.ShapeDtypeStruct((B * S, E), tokens.dtype),
        grid_spec=grid_spec,
        compiler_params=pltpu.CompilerParams(**comp_kwargs),
    )(tokens2d, wq_p, bq_p, wk_p, bk_p, wv_p, bv_p, wl_heads, bl)

    return out2d.reshape(B, S, E)


def msa_reference(tokens, wq, bq, wk, bk, wv, bv, w_last, b_last, *, num_heads):
    """Pure-JAX (f32) replica of the PyTorch forward for validation."""
    H = num_heads
    D = tokens.shape[-1] // H
    outs = []
    for h in range(H):
        q = tokens @ wq[h] + bq[h]
        k = tokens @ wk[h] + bk[h]
        v = tokens @ wv[h] + bv[h]
        s = jax.nn.softmax((q @ jnp.swapaxes(k, -1, -2)) / D, axis=-1)
        outs.append(s @ v)
    cat = jnp.concatenate(outs, axis=-1)
    return cat @ w_last.T + b_last


if __name__ == "__main__":
    B, S, E, H = 2, 8, 32, 2
    D = E // H

    key = jax.random.PRNGKey(0)
    keys = jax.random.split(key, 10)

    tokens = jax.random.normal(keys[0], (B, S, E), dtype=jnp.float32)

    lim_h = 1.0 / (E ** 0.5)
    wq = jax.random.uniform(keys[1], (H, E, D), jnp.float32, -lim_h, lim_h)
    bq = jax.random.uniform(keys[2], (H, 1, D), jnp.float32, -lim_h, lim_h)
    wk = jax.random.uniform(keys[3], (H, E, D), jnp.float32, -lim_h, lim_h)
    bk = jax.random.uniform(keys[4], (H, 1, D), jnp.float32, -lim_h, lim_h)
    wv = jax.random.uniform(keys[5], (H, E, D), jnp.float32, -lim_h, lim_h)
    bv = jax.random.uniform(keys[6], (H, 1, D), jnp.float32, -lim_h, lim_h)
    w_last = jax.random.uniform(keys[7], (E, E), jnp.float32, -lim_h, lim_h)
    b_last = jax.random.uniform(keys[8], (1, E), jnp.float32, -lim_h, lim_h)

    ref = msa_reference(tokens, wq, bq, wk, bk, wv, bv, w_last, b_last, num_heads=H)

    # Fast path: bf16 matmuls (MXU-native) with f32 accumulation / f32 softmax.
    out_bf16 = msa_forward(tokens, wq, bq, wk, bk, wv, bv, w_last, b_last,
                           num_heads=H, compute_dtype=jnp.bfloat16)
    out_bf16 = jax.block_until_ready(out_bf16)
    assert out_bf16.shape == (B, S, E)
    assert jnp.allclose(out_bf16, ref, atol=5e-2, rtol=5e-2), "bf16 path mismatch vs reference"

    # Exact path: f32 compute dtype, tight tolerance vs the pure-JAX reference.
    out_f32 = msa_forward(tokens, wq, bq, wk, bk, wv, bv, w_last, b_last,
                          num_heads=H, compute_dtype=jnp.float32)
    out_f32 = jax.block_until_ready(out_f32)
    assert jnp.allclose(out_f32, ref, atol=1e-4, rtol=1e-4), "f32 path mismatch vs reference"

    print("KERNEL_OK")
</pallas_src>

<mosaic_0001>
module attributes {stable_mosaic.version = 11 : i64} {
  func.func @_msa_kernel(%arg0: i32, %arg1: memref<16x32xbf16, #tpu.memory_space<vmem>>, %arg2: memref<32x32xbf16, #tpu.memory_space<vmem>>, %arg3: memref<1x32xf32, #tpu.memory_space<vmem>>, %arg4: memref<32x32xbf16, #tpu.memory_space<vmem>>, %arg5: memref<1x32xf32, #tpu.memory_space<vmem>>, %arg6: memref<32x32xbf16, #tpu.memory_space<vmem>>, %arg7: memref<1x32xf32, #tpu.memory_space<vmem>>, %arg8: memref<2x16x32xbf16, #tpu.memory_space<vmem>>, %arg9: memref<1x32xf32, #tpu.memory_space<vmem>>, %arg10: memref<16x32xf32, #tpu.memory_space<vmem>>) attributes {dimension_semantics = [#tpu.dimension_semantics<parallel>], iteration_bounds = array<i64: 1>, scalar_prefetch = 0 : i64, scratch_operands = 0 : i64, tpu.core_type = #tpu.core_type<tc>, window_params = [{transform_indices = @transform_0, window_bounds = array<i64: 16, 32>}, {pipeline_mode = #tpu.pipeline_mode<synchronous>, transform_indices = @transform_1, window_bounds = array<i64: 32, 32>}, {pipeline_mode = #tpu.pipeline_mode<synchronous>, transform_indices = @transform_2, window_bounds = array<i64: 1, 32>}, {pipeline_mode = #tpu.pipeline_mode<synchronous>, transform_indices = @transform_3, window_bounds = array<i64: 32, 32>}, {pipeline_mode = #tpu.pipeline_mode<synchronous>, transform_indices = @transform_4, window_bounds = array<i64: 1, 32>}, {pipeline_mode = #tpu.pipeline_mode<synchronous>, transform_indices = @transform_5, window_bounds = array<i64: 32, 32>}, {pipeline_mode = #tpu.pipeline_mode<synchronous>, transform_indices = @transform_6, window_bounds = array<i64: 1, 32>}, {pipeline_mode = #tpu.pipeline_mode<synchronous>, transform_indices = @transform_7, window_bounds = array<i64: 2, 16, 32>}, {pipeline_mode = #tpu.pipeline_mode<synchronous>, transform_indices = @transform_8, window_bounds = array<i64: 1, 32>}, {transform_indices = @transform_9, window_bounds = array<i64: 16, 32>}]} {
    %c0 = arith.constant 0 : index
    %c0_0 = arith.constant 0 : index
    %0 = vector.load %arg1[%c0, %c0_0] : memref<16x32xbf16, #tpu.memory_space<vmem>>, vector<16x32xbf16>
    %c0_1 = arith.constant 0 : index
    %c0_2 = arith.constant 0 : index
    %1 = vector.load %arg2[%c0_1, %c0_2] : memref<32x32xbf16, #tpu.memory_space<vmem>>, vector<32x32xbf16>
    %cst = arith.constant dense<0.000000e+00> : vector<16x32xf32>
    %2 = tpu.matmul %0, %1, %cst {dimension_numbers = #tpu.dot_dimension_numbers<[1], [0], [0], [1], [0, 0, 1, 1], [], []>} : vector<16x32xbf16>, vector<32x32xbf16>, vector<16x32xf32> -> vector<16x32xf32>
    %c0_3 = arith.constant 0 : index
    %c0_4 = arith.constant 0 : index
    %3 = vector.load %arg3[%c0_3, %c0_4] : memref<1x32xf32, #tpu.memory_space<vmem>>, vector<1x32xf32>
    %4 = vector.broadcast %3 : vector<1x32xf32> to vector<16x32xf32>
    %5 = arith.addf %2, %4 : vector<16x32xf32>
    %c0_5 = arith.constant 0 : index
    %c0_6 = arith.constant 0 : index
    %6 = vector.load %arg4[%c0_5, %c0_6] : memref<32x32xbf16, #tpu.memory_space<vmem>>, vector<32x32xbf16>
    %cst_7 = arith.constant dense<0.000000e+00> : vector<16x32xf32>
    %7 = tpu.matmul %0, %6, %cst_7 {dimension_numbers = #tpu.dot_dimension_numbers<[1], [0], [0], [1], [0, 0, 1, 1], [], []>} : vector<16x32xbf16>, vector<32x32xbf16>, vector<16x32xf32> -> vector<16x32xf32>
    %c0_8 = arith.constant 0 : index
    %c0_9 = arith.constant 0 : index
    %8 = vector.load %arg5[%c0_8, %c0_9] : memref<1x32xf32, #tpu.memory_space<vmem>>, vector<1x32xf32>
    %9 = vector.broadcast %8 : vector<1x32xf32> to vector<16x32xf32>
    %10 = arith.addf %7, %9 : vector<16x32xf32>
    %c0_10 = arith.constant 0 : index
    %c0_11 = arith.constant 0 : index
    %11 = vector.load %arg6[%c0_10, %c0_11] : memref<32x32xbf16, #tpu.memory_space<vmem>>, vector<32x32xbf16>
    %cst_12 = arith.constant dense<0.000000e+00> : vector<16x32xf32>
    %12 = tpu.matmul %0, %11, %cst_12 {dimension_numbers = #tpu.dot_dimension_numbers<[1], [0], [0], [1], [0, 0, 1, 1], [], []>} : vector<16x32xbf16>, vector<32x32xbf16>, vector<16x32xf32> -> vector<16x32xf32>
    %c0_13 = arith.constant 0 : index
    %c0_14 = arith.constant 0 : index
    %13 = vector.load %arg7[%c0_13, %c0_14] : memref<1x32xf32, #tpu.memory_space<vmem>>, vector<1x32xf32>
    %14 = vector.broadcast %13 : vector<1x32xf32> to vector<16x32xf32>
    %15 = arith.addf %12, %14 : vector<16x32xf32>
    %c0_15 = arith.constant 0 : index
    %c0_16 = arith.constant 0 : index
    %16 = vector.load %arg9[%c0_15, %c0_16] : memref<1x32xf32, #tpu.memory_space<vmem>>, vector<1x32xf32>
    %cst_17 = arith.constant 0.000000e+00 : f32
    %17 = vector.broadcast %cst_17 : f32 to vector<8x32xf32>
    %18 = vector.extract_strided_slice %5 {offsets = [0, 0], sizes = [8, 16], strides = [1, 1]} : vector<16x32xf32> to vector<8x16xf32>
    %19 = arith.truncf %18 : vector<8x16xf32> to vector<8x16xbf16>
    %20 = vector.extract_strided_slice %10 {offsets = [0, 0], sizes = [8, 16], strides = [1, 1]} : vector<16x32xf32> to vector<8x16xf32>
    %21 = arith.truncf %20 : vector<8x16xf32> to vector<8x16xbf16>
    %22 = vector.extract_strided_slice %15 {offsets = [0, 0], sizes = [8, 16], strides = [1, 1]} : vector<16x32xf32> to vector<8x16xf32>
    %23 = arith.truncf %22 : vector<8x16xf32> to vector<8x16xbf16>
    %cst_18 = arith.constant dense<0.000000e+00> : vector<8x8xf32>
    %24 = tpu.matmul %19, %21, %cst_18 {dimension_numbers = #tpu.dot_dimension_numbers<[1], [1], [0], [0], [0, 0, 1, 0], [], []>} : vector<8x16xbf16>, vector<8x16xbf16>, vector<8x8xf32> -> vector<8x8xf32>
    %cst_19 = arith.constant 6.250000e-02 : f32
    %25 = vector.broadcast %cst_19 : f32 to vector<8x8xf32>
    %26 = arith.mulf %24, %25 : vector<8x8xf32>
    %cst_20 = arith.constant dense<0xFF800000> : vector<8xf32>
    %27 = vector.multi_reduction <maximumf>, %26, %cst_20 [1] : vector<8x8xf32> to vector<8xf32>
    %28 = vector.shape_cast %27 : vector<8xf32> to vector<8x1xf32>
    %29 = vector.broadcast %28 : vector<8x1xf32> to vector<8x8xf32>
    %30 = arith.subf %26, %29 : vector<8x8xf32>
    %31 = math.exp %30 : vector<8x8xf32>
    %cst_21 = arith.constant dense<0.000000e+00> : vector<8xf32>
    %32 = vector.multi_reduction <add>, %31, %cst_21 [1] : vector<8x8xf32> to vector<8xf32>
    %33 = vector.shape_cast %32 : vector<8xf32> to vector<8x1xf32>
    %34 = tpu.reciprocal %33 {approx = true} : vector<8x1xf32> -> vector<8x1xf32>
    %35 = vector.broadcast %34 : vector<8x1xf32> to vector<8x8xf32>
    %36 = arith.mulf %31, %35 : vector<8x8xf32>
    %37 = arith.truncf %36 : vector<8x8xf32> to vector<8x8xbf16>
    %cst_22 = arith.constant dense<0.000000e+00> : vector<8x16xf32>
    %38 = tpu.matmul %37, %23, %cst_22 {dimension_numbers = #tpu.dot_dimension_numbers<[1], [0], [0], [1], [0, 0, 1, 1], [], []>} : vector<8x8xbf16>, vector<8x16xbf16>, vector<8x16xf32> -> vector<8x16xf32>
    %39 = arith.truncf %38 : vector<8x16xf32> to vector<8x16xbf16>
    %c0_23 = arith.constant 0 : index
    %c0_24 = arith.constant 0 : index
    %c0_25 = arith.constant 0 : index
    %40 = vector.load %arg8[%c0_23, %c0_24, %c0_25] : memref<2x16x32xbf16, #tpu.memory_space<vmem>>, vector<1x16x32xbf16>
    %41 = vector.shape_cast %40 : vector<1x16x32xbf16> to vector<16x32xbf16>
    %cst_26 = arith.constant dense<0.000000e+00> : vector<8x32xf32>
    %42 = tpu.matmul %39, %41, %cst_26 {dimension_numbers = #tpu.dot_dimension_numbers<[1], [0], [0], [1], [0, 0, 1, 1], [], []>} : vector<8x16xbf16>, vector<16x32xbf16>, vector<8x32xf32> -> vector<8x32xf32>
    %43 = arith.addf %17, %42 : vector<8x32xf32>
    %44 = vector.extract_strided_slice %5 {offsets = [0, 16], sizes = [8, 16], strides = [1, 1]} : vector<16x32xf32> to vector<8x16xf32>
    %45 = arith.truncf %44 : vector<8x16xf32> to vector<8x16xbf16>
    %46 = vector.extract_strided_slice %10 {offsets = [0, 16], sizes = [8, 16], strides = [1, 1]} : vector<16x32xf32> to vector<8x16xf32>
    %47 = arith.truncf %46 : vector<8x16xf32> to vector<8x16xbf16>
    %48 = vector.extract_strided_slice %15 {offsets = [0, 16], sizes = [8, 16], strides = [1, 1]} : vector<16x32xf32> to vector<8x16xf32>
    %49 = arith.truncf %48 : vector<8x16xf32> to vector<8x16xbf16>
    %cst_27 = arith.constant dense<0.000000e+00> : vector<8x8xf32>
    %50 = tpu.matmul %45, %47, %cst_27 {dimension_numbers = #tpu.dot_dimension_numbers<[1], [1], [0], [0], [0, 0, 1, 0], [], []>} : vector<8x16xbf16>, vector<8x16xbf16>, vector<8x8xf32> -> vector<8x8xf32>
    %cst_28 = arith.constant 6.250000e-02 : f32
    %51 = vector.broadcast %cst_28 : f32 to vector<8x8xf32>
    %52 = arith.mulf %50, %51 : vector<8x8xf32>
    %cst_29 = arith.constant dense<0xFF800000> : vector<8xf32>
    %53 = vector.multi_reduction <maximumf>, %52, %cst_29 [1] : vector<8x8xf32> to vector<8xf32>
    %54 = vector.shape_cast %53 : vector<8xf32> to vector<8x1xf32>
    %55 = vector.broadcast %54 : vector<8x1xf32> to vector<8x8xf32>
    %56 = arith.subf %52, %55 : vector<8x8xf32>
    %57 = math.exp %56 : vector<8x8xf32>
    %cst_30 = arith.constant dense<0.000000e+00> : vector<8xf32>
    %58 = vector.multi_reduction <add>, %57, %cst_30 [1] : vector<8x8xf32> to vector<8xf32>
    %59 = vector.shape_cast %58 : vector<8xf32> to vector<8x1xf32>
    %60 = tpu.reciprocal %59 {approx = true} : vector<8x1xf32> -> vector<8x1xf32>
    %61 = vector.broadcast %60 : vector<8x1xf32> to vector<8x8xf32>
    %62 = arith.mulf %57, %61 : vector<8x8xf32>
    %63 = arith.truncf %62 : vector<8x8xf32> to vector<8x8xbf16>
    %cst_31 = arith.constant dense<0.000000e+00> : vector<8x16xf32>
    %64 = tpu.matmul %63, %49, %cst_31 {dimension_numbers = #tpu.dot_dimension_numbers<[1], [0], [0], [1], [0, 0, 1, 1], [], []>} : vector<8x8xbf16>, vector<8x16xbf16>, vector<8x16xf32> -> vector<8x16xf32>
    %65 = arith.truncf %64 : vector<8x16xf32> to vector<8x16xbf16>
    %c1 = arith.constant 1 : index
    %c0_32 = arith.constant 0 : index
    %c0_33 = arith.constant 0 : index
    %66 = vector.load %arg8[%c1, %c0_32, %c0_33] : memref<2x16x32xbf16, #tpu.memory_space<vmem>>, vector<1x16x32xbf16>
    %67 = vector.shape_cast %66 : vector<1x16x32xbf16> to vector<16x32xbf16>
    %cst_34 = arith.constant dense<0.000000e+00> : vector<8x32xf32>
    %68 = tpu.matmul %65, %67, %cst_34 {dimension_numbers = #tpu.dot_dimension_numbers<[1], [0], [0], [1], [0, 0, 1, 1], [], []>} : vector<8x16xbf16>, vector<16x32xbf16>, vector<8x32xf32> -> vector<8x32xf32>
    %69 = arith.addf %43, %68 : vector<8x32xf32>
    %70 = vector.broadcast %16 : vector<1x32xf32> to vector<8x32xf32>
    %71 = arith.addf %69, %70 : vector<8x32xf32>
    %c0_35 = arith.constant 0 : index
    %c0_36 = arith.constant 0 : index
    %72 = vector.load %arg10[%c0_35, %c0_36] : memref<16x32xf32, #tpu.memory_space<vmem>>, vector<8x32xf32>
    tpu.vector_store %arg10[%c0_35, %c0_36], %71 {strides = array<i32>} : memref<16x32xf32, #tpu.memory_space<vmem>>, vector<8x32xf32>,
    %cst_37 = arith.constant 0.000000e+00 : f32
    %73 = vector.broadcast %cst_37 : f32 to vector<8x32xf32>
    %74 = vector.extract_strided_slice %5 {offsets = [8, 0], sizes = [8, 16], strides = [1, 1]} : vector<16x32xf32> to vector<8x16xf32>
    %75 = arith.truncf %74 : vector<8x16xf32> to vector<8x16xbf16>
    %76 = vector.extract_strided_slice %10 {offsets = [8, 0], sizes = [8, 16], strides = [1, 1]} : vector<16x32xf32> to vector<8x16xf32>
    %77 = arith.truncf %76 : vector<8x16xf32> to vector<8x16xbf16>
    %78 = vector.extract_strided_slice %15 {offsets = [8, 0], sizes = [8, 16], strides = [1, 1]} : vector<16x32xf32> to vector<8x16xf32>
    %79 = arith.truncf %78 : vector<8x16xf32> to vector<8x16xbf16>
    %cst_38 = arith.constant dense<0.000000e+00> : vector<8x8xf32>
    %80 = tpu.matmul %75, %77, %cst_38 {dimension_numbers = #tpu.dot_dimension_numbers<[1], [1], [0], [0], [0, 0, 1, 0], [], []>} : vector<8x16xbf16>, vector<8x16xbf16>, vector<8x8xf32> -> vector<8x8xf32>
    %cst_39 = arith.constant 6.250000e-02 : f32
    %81 = vector.broadcast %cst_39 : f32 to vector<8x8xf32>
    %82 = arith.mulf %80, %81 : vector<8x8xf32>
    %cst_40 = arith.constant dense<0xFF800000> : vector<8xf32>
    %83 = vector.multi_reduction <maximumf>, %82, %cst_40 [1] : vector<8x8xf32> to vector<8xf32>
    %84 = vector.shape_cast %83 : vector<8xf32> to vector<8x1xf32>
    %85 = vector.broadcast %84 : vector<8x1xf32> to vector<8x8xf32>
    %86 = arith.subf %82, %85 : vector<8x8xf32>
    %87 = math.exp %86 : vector<8x8xf32>
    %cst_41 = arith.constant dense<0.000000e+00> : vector<8xf32>
    %88 = vector.multi_reduction <add>, %87, %cst_41 [1] : vector<8x8xf32> to vector<8xf32>
    %89 = vector.shape_cast %88 : vector<8xf32> to vector<8x1xf32>
    %90 = tpu.reciprocal %89 {approx = true} : vector<8x1xf32> -> vector<8x1xf32>
    %91 = vector.broadcast %90 : vector<8x1xf32> to vector<8x8xf32>
    %92 = arith.mulf %87, %91 : vector<8x8xf32>
    %93 = arith.truncf %92 : vector<8x8xf32> to vector<8x8xbf16>
    %cst_42 = arith.constant dense<0.000000e+00> : vector<8x16xf32>
    %94 = tpu.matmul %93, %79, %cst_42 {dimension_numbers = #tpu.dot_dimension_numbers<[1], [0], [0], [1], [0, 0, 1, 1], [], []>} : vector<8x8xbf16>, vector<8x16xbf16>, vector<8x16xf32> -> vector<8x16xf32>
    %95 = arith.truncf %94 : vector<8x16xf32> to vector<8x16xbf16>
    %c0_43 = arith.constant 0 : index
    %c0_44 = arith.constant 0 : index
    %c0_45 = arith.constant 0 : index
    %96 = vector.load %arg8[%c0_43, %c0_44, %c0_45] : memref<2x16x32xbf16, #tpu.memory_space<vmem>>, vector<1x16x32xbf16>
    %97 = vector.shape_cast %96 : vector<1x16x32xbf16> to vector<16x32xbf16>
    %cst_46 = arith.constant dense<0.000000e+00> : vector<8x32xf32>
    %98 = tpu.matmul %95, %97, %cst_46 {dimension_numbers = #tpu.dot_dimension_numbers<[1], [0], [0], [1], [0, 0, 1, 1], [], []>} : vector<8x16xbf16>, vector<16x32xbf16>, vector<8x32xf32> -> vector<8x32xf32>
    %99 = arith.addf %73, %98 : vector<8x32xf32>
    %100 = vector.extract_strided_slice %5 {offsets = [8, 16], sizes = [8, 16], strides = [1, 1]} : vector<16x32xf32> to vector<8x16xf32>
    %101 = arith.truncf %100 : vector<8x16xf32> to vector<8x16xbf16>
    %102 = vector.extract_strided_slice %10 {offsets = [8, 16], sizes = [8, 16], strides = [1, 1]} : vector<16x32xf32> to vector<8x16xf32>
    %103 = arith.truncf %102 : vector<8x16xf32> to vector<8x16xbf16>
    %104 = vector.extract_strided_slice %15 {offsets = [8, 16], sizes = [8, 16], strides = [1, 1]} : vector<16x32xf32> to vector<8x16xf32>
    %105 = arith.truncf %104 : vector<8x16xf32> to vector<8x16xbf16>
    %cst_47 = arith.constant dense<0.000000e+00> : vector<8x8xf32>
    %106 = tpu.matmul %101, %103, %cst_47 {dimension_numbers = #tpu.dot_dimension_numbers<[1], [1], [0], [0], [0, 0, 1, 0], [], []>} : vector<8x16xbf16>, vector<8x16xbf16>, vector<8x8xf32> -> vector<8x8xf32>
    %cst_48 = arith.constant 6.250000e-02 : f32
    %107 = vector.broadcast %cst_48 : f32 to vector<8x8xf32>
    %108 = arith.mulf %106, %107 : vector<8x8xf32>
    %cst_49 = arith.constant dense<0xFF800000> : vector<8xf32>
    %109 = vector.multi_reduction <maximumf>, %108, %cst_49 [1] : vector<8x8xf32> to vector<8xf32>
    %110 = vector.shape_cast %109 : vector<8xf32> to vector<8x1xf32>
    %111 = vector.broadcast %110 : vector<8x1xf32> to vector<8x8xf32>
    %112 = arith.subf %108, %111 : vector<8x8xf32>
    %113 = math.exp %112 : vector<8x8xf32>
    %cst_50 = arith.constant dense<0.000000e+00> : vector<8xf32>
    %114 = vector.multi_reduction <add>, %113, %cst_50 [1] : vector<8x8xf32> to vector<8xf32>
    %115 = vector.shape_cast %114 : vector<8xf32> to vector<8x1xf32>
    %116 = tpu.reciprocal %115 {approx = true} : vector<8x1xf32> -> vector<8x1xf32>
    %117 = vector.broadcast %116 : vector<8x1xf32> to vector<8x8xf32>
    %118 = arith.mulf %113, %117 : vector<8x8xf32>
    %119 = arith.truncf %118 : vector<8x8xf32> to vector<8x8xbf16>
    %cst_51 = arith.constant dense<0.000000e+00> : vector<8x16xf32>
    %120 = tpu.matmul %119, %105, %cst_51 {dimension_numbers = #tpu.dot_dimension_numbers<[1], [0], [0], [1], [0, 0, 1, 1], [], []>} : vector<8x8xbf16>, vector<8x16xbf16>, vector<8x16xf32> -> vector<8x16xf32>
    %121 = arith.truncf %120 : vector<8x16xf32> to vector<8x16xbf16>
    %c1_52 = arith.constant 1 : index
    %c0_53 = arith.constant 0 : index
    %c0_54 = arith.constant 0 : index
    %122 = vector.load %arg8[%c1_52, %c0_53, %c0_54] : memref<2x16x32xbf16, #tpu.memory_space<vmem>>, vector<1x16x32xbf16>
    %123 = vector.shape_cast %122 : vector<1x16x32xbf16> to vector<16x32xbf16>
    %cst_55 = arith.constant dense<0.000000e+00> : vector<8x32xf32>
    %124 = tpu.matmul %121, %123, %cst_55 {dimension_numbers = #tpu.dot_dimension_numbers<[1], [0], [0], [1], [0, 0, 1, 1], [], []>} : vector<8x16xbf16>, vector<16x32xbf16>, vector<8x32xf32> -> vector<8x32xf32>
    %125 = arith.addf %99, %124 : vector<8x32xf32>
    %126 = vector.broadcast %16 : vector<1x32xf32> to vector<8x32xf32>
    %127 = arith.addf %125, %126 : vector<8x32xf32>
    %c8 = arith.constant 8 : index
    %c0_56 = arith.constant 0 : index
    %128 = vector.load %arg10[%c8, %c0_56] : memref<16x32xf32, #tpu.memory_space<vmem>>, vector<8x32xf32>
    tpu.vector_store %arg10[%c8, %c0_56], %127 {strides = array<i32>} : memref<16x32xf32, #tpu.memory_space<vmem>>, vector<8x32xf32>,
    return
  }
  func.func @transform_0(%arg0: i32) -> (i32, i32) {
    %c0_i32 = arith.constant 0 : i32
    %c0_i32_0 = arith.constant 0 : i32
    return %arg0, %c0_i32 : i32, i32
  }
  func.func @transform_1(%arg0: i32) -> (i32, i32) {
    %c0_i32 = arith.constant 0 : i32
    %c0_i32_0 = arith.constant 0 : i32
    %c0_i32_1 = arith.constant 0 : i32
    return %c0_i32, %c0_i32_0 : i32, i32
  }
  func.func @transform_2(%arg0: i32) -> (i32, i32) {
    %c0_i32 = arith.constant 0 : i32
    %c0_i32_0 = arith.constant 0 : i32
    %c0_i32_1 = arith.constant 0 : i32
    return %c0_i32, %c0_i32_0 : i32, i32
  }
  func.func @transform_3(%arg0: i32) -> (i32, i32) {
    %c0_i32 = arith.constant 0 : i32
    %c0_i32_0 = arith.constant 0 : i32
    %c0_i32_1 = arith.constant 0 : i32
    return %c0_i32, %c0_i32_0 : i32, i32
  }
  func.func @transform_4(%arg0: i32) -> (i32, i32) {
    %c0_i32 = arith.constant 0 : i32
    %c0_i32_0 = arith.constant 0 : i32
    %c0_i32_1 = arith.constant 0 : i32
    return %c0_i32, %c0_i32_0 : i32, i32
  }
  func.func @transform_5(%arg0: i32) -> (i32, i32) {
    %c0_i32 = arith.constant 0 : i32
    %c0_i32_0 = arith.constant 0 : i32
    %c0_i32_1 = arith.constant 0 : i32
    return %c0_i32, %c0_i32_0 : i32, i32
  }
  func.func @transform_6(%arg0: i32) -> (i32, i32) {
    %c0_i32 = arith.constant 0 : i32
    %c0_i32_0 = arith.constant 0 : i32
    %c0_i32_1 = arith.constant 0 : i32
    return %c0_i32, %c0_i32_0 : i32, i32
  }
  func.func @transform_7(%arg0: i32) -> (i32, i32, i32) {
    %c0_i32 = arith.constant 0 : i32
    %c0_i32_0 = arith.constant 0 : i32
    %c0_i32_1 = arith.constant 0 : i32
    %c0_i32_2 = arith.constant 0 : i32
    return %c0_i32, %c0_i32_0, %c0_i32_1 : i32, i32, i32
  }
  func.func @transform_8(%arg0: i32) -> (i32, i32) {
    %c0_i32 = arith.constant 0 : i32
    %c0_i32_0 = arith.constant 0 : i32
    %c0_i32_1 = arith.constant 0 : i32
    return %c0_i32, %c0_i32_0 : i32, i32
  }
  func.func @transform_9(%arg0: i32) -> (i32, i32) {
    %c0_i32 = arith.constant 0 : i32
    %c0_i32_0 = arith.constant 0 : i32
    return %arg0, %c0_i32 : i32, i32
  }
}

</mosaic_0001>

<bundles_post_ra>
// kernel: tpu_custom_call.1
= control target key start
LH: loop header
LB: loop body
LE: loop exit
PB: predicated region body
PF: predicated region fallthrough
CT: control target
= control target key end

     0   :  { %14 = vsyncpa [#allocation3], 0  ;;  %s1563_s0 = inlined_call_operand.hbm [shape: bf16[16,32], index: 0, kind: input, shape index: {}]   ;;  %s1564_s1 = inlined_call_operand.hbm [shape: bf16[32,32], index: 1, kind: input, shape index: {}]   ;;  %s1565_s2 = inlined_call_operand.vmem [shape: f32[1,32], index: 2, kind: input, shape index: {}]   ;;  %s1566_s3 = inlined_call_operand.hbm [shape: bf16[32,32], index: 3, kind: input, shape index: {}]   ;;  %s1567_s4 = inlined_call_operand.vmem [shape: f32[1,32], index: 4, kind: input, shape index: {}]   ;;  %s1568_s5 = inlined_call_operand.vmem [shape: bf16[32,32], index: 5, kind: input, shape index: {}]   ;;  %s1569_s6 = inlined_call_operand.vmem [shape: f32[1,32], index: 6, kind: input, shape index: {}]   ;;  %s1570_s7 = inlined_call_operand.hbm [shape: bf16[2,16,32], index: 7, kind: input, shape index: {}]   ;;  %s1571_s8 = inlined_call_operand.vmem [shape: f32[1,32], index: 8, kind: input, shape index: {}]   ;;  %s1572_s9 = inlined_call_operand.hbm [shape: f32[16,32], index: 9, kind: output, shape index: {}]  }
   0x1   :  { %15 = vsyncpa [#allocation6], 0 }
   0x2   :  { %16 = vsyncpa [#allocation9], 0 }
   0x3   :  { %17 = vsyncpa [#allocation4], 0  ;;  %s1294_s30 = smov [#allocation5]   ;;  %s1295_s11 = smov [#allocation2]  }
   0x4   :  { %s35_s10 = sshll.u32 %s1294_s30, 4  ;;  %s23_s12 = sshll.u32 %s1295_s11, 4  ;;  %s36_s10 = int_to_ptr.vmem [resolvable:$true] %s35_s10  ;;  %s1356_s12 = int_to_ptr.vmem [resolvable:$true] %s23_s12 }
   0x5   :  { %s1176_s15 = scalar_lea.hbm %s1564_s1, 256 }
   0x6   :  { %p1177_p0 = scmp.ne.s32.totalorder %s1564_s1, %s1176_s15  ;;  %p1180_p1 = scmp.lt.u32.totalorder %s1176_s15, %s1564_s1 }
   0x8   :  { %p1182_p2 = pnand %p1180_p1, %p1177_p0 }
   0xa   :  { %1185 = shalt.err (!%p1182_p2)
}
   0xb   :  { %s1186_s20 = scalar_lea.vmem %s36_s10, 256  ;;  %p1191_p4 = scmp.lt.s32.totalorder %s36_s10, %s36_s10 }
   0xc   :  { %p1187_p3 = scmp.ne.s32.totalorder %s36_s10, %s1186_s20  ;;  %p1192_p5 = scmp.lt.s32.totalorder %s1186_s20, %s1186_s20 }
   0xe   :  { %p1193_p6 = por %p1192_p5, %p1191_p4 }
  0x10   :  { %p1194_p7 = pnand %p1193_p6, %p1187_p3 }
  0x12   :  { %1197 = shalt.err (!%p1194_p7)
}
  0x13   :  { %s1296_s21 = smov 64   ;;  %s1297_s22 = smov 4  }
  0x14   :  { %41 = dma.hbm_to_vmem [thread:$0]  %s1564_s1, 256, %s36_s10, [#allocation6], %s1296_s21, %s1296_s21, %s1297_s22  }
  0x15   :  { %s1198_s27 = scalar_lea.hbm %s1563_s0, 128 }
  0x16   :  { %p1199_p8 = scmp.ne.s32.totalorder %s1563_s0, %s1198_s27  ;;  %p1202_p9 = scmp.lt.u32.totalorder %s1198_s27, %s1563_s0 }
  0x18   :  { %p1204_p10 = pnand %p1202_p9, %p1199_p8 }
  0x1a   :  { %1207 = shalt.err (!%p1204_p10)
}
  0x1b   :  { %s1208_s13 = scalar_lea.vmem %s1356_s12, 128  ;;  %p1213_p12 = scmp.lt.s32.totalorder %s1356_s12, %s1356_s12 }
  0x1c   :  { %p1209_p11 = scmp.ne.s32.totalorder %s1356_s12, %s1208_s13  ;;  %p1214_p13 = scmp.lt.s32.totalorder %s1208_s13, %s1208_s13 }
  0x1e   :  { %p1215_p0 = por %p1214_p13, %p1213_p12 }
  0x20   :  { %p1216_p1 = pnand %p1215_p0, %p1209_p11 }
  0x22   :  { %1219 = shalt.err (!%p1216_p1)
}
  0x23   :  { %29 = dma.hbm_to_vmem [thread:$0]  %s1563_s0, 128, %s1356_s12, [#allocation3], %s1296_s21, %s1296_s21, %s1297_s22  }
  0x24   :  { %s1298_s14 = smov [#allocation7]   ;;  %s1299_s16 = smov [#allocation8]  }
  0x25   :  { %s49_s15 = sshll.u32 %s1298_s14, 4  ;;  %s67_s17 = sshll.u32 %s1299_s16, 4  ;;  %s50_s15 = int_to_ptr.vmem [resolvable:$true] %s49_s15  ;;  %s1393_s17 = int_to_ptr.vmem [resolvable:$true] %s67_s17 }
  0x26   :  { %s1220_s20 = scalar_lea.hbm %s1566_s3, 256 }
  0x27   :  { %p1221_p2 = scmp.ne.s32.totalorder %s1566_s3, %s1220_s20  ;;  %p1224_p3 = scmp.lt.u32.totalorder %s1220_s20, %s1566_s3 }
  0x29   :  { %p1226_p4 = pnand %p1224_p3, %p1221_p2 }
  0x2b   :  { %1229 = shalt.err (!%p1226_p4)
}
  0x2c   :  { %s1230_s0 = scalar_lea.vmem %s50_s15, 256  ;;  %p1235_p6 = scmp.lt.s32.totalorder %s50_s15, %s50_s15 }
  0x2d   :  { %p1231_p5 = scmp.ne.s32.totalorder %s50_s15, %s1230_s0  ;;  %p1236_p7 = scmp.lt.s32.totalorder %s1230_s0, %s1230_s0 }
  0x2f   :  { %p1237_p8 = por %p1236_p7, %p1235_p6 }
  0x31   :  { %p1238_p9 = pnand %p1237_p8, %p1231_p5 }
  0x33   :  { %1241 = shalt.err (!%p1238_p9)
}
  0x34   :  { %55 = dma.hbm_to_vmem [thread:$0]  %s1566_s3, 256, %s50_s15, [#allocation6], %s1296_s21, %s1296_s21, %s1297_s22  }
  0x35   :  { %s1242_s30 = scalar_lea.hbm %s1570_s7, 256 }
  0x36   :  { %p1243_p10 = scmp.ne.s32.totalorder %s1570_s7, %s1242_s30  ;;  %p1246_p11 = scmp.lt.u32.totalorder %s1242_s30, %s1570_s7 }
  0x38   :  { %p1248_p12 = pnand %p1246_p11, %p1243_p10 }
  0x3a   :  { %1251 = shalt.err (!%p1248_p12)
}
  0x3b   :  { %s1252_s14 = scalar_lea.vmem %s1393_s17, 256  ;;  %p1257_p0 = scmp.lt.s32.totalorder %s1393_s17, %s1393_s17 }
  0x3c   :  { %p1253_p13 = scmp.ne.s32.totalorder %s1393_s17, %s1252_s14  ;;  %p1258_p1 = scmp.lt.s32.totalorder %s1252_s14, %s1252_s14 }
  0x3e   :  { %p1259_p2 = por %p1258_p1, %p1257_p0 }
  0x40   :  { %p1260_p3 = pnand %p1259_p2, %p1253_p13 }
  0x42   :  { %1263 = shalt.err (!%p1260_p3)
}
  0x43   :  { %73 = dma.hbm_to_vmem [thread:$0]  %s1570_s7, 256, %s1393_s17, [#allocation9], %s1296_s21, %s1296_s21, %s1297_s22  }
  0x44   :  { %1286 = dma.done.wait [#allocation3], 128  }
  0x45   :  { %1287 = vsyncadd [#allocation3], 4294967168 }
  0x46   :  { %1288 = dma.done.wait [#allocation6], 512  }
  0x47   :  { %1289 = vsyncadd [#allocation6], 4294966784 }
  0x48   :  { %1290 = dma.done.wait [#allocation9], 256  }
  0x49   :  { %1291 = vsyncadd [#allocation9], 4294967040  ;;  %v1300_v0 = vmov 0.0   ;;  %vm1301_vm0 = vmmov 0   ;;  %v1149_v1 = vld [vmem:[#allocation7] sm:$0xff]   ;;  %v1150_v2 = vld [vmem:[#allocation7 + $0x8] sm:$0xff]  }
  0x4a   :  { %1049 = vmatprep.subr.bf16.mxu1 %v1300_v0  ;;  %1041 = vmatprep.subr.bf16.mxu0 %v1300_v0  ;;  %v1151_v3 = vld [vmem:[#allocation5] sm:$0xff]   ;;  %v1153_v4 = vld [vmem:[#allocation5 + $0x8] sm:$0xff]   ;;  %v1152_v5 = vld [vmem:[#allocation2] sm:$0xff]   ;;  %vm119_vm1 = vcmask 261120   ;;  %vm296_vm2 = vcmask 130048   ;;  %vm344_vm3 = vcmask 64512  }
  0x4b   :  { %1053 = vmatprep.mubr.msk.bf16.mxu1 %vm1301_vm0, %v1300_v0  ;;  %1045 = vmatprep.mubr.msk.bf16.mxu0 %vm1301_vm0, %v1300_v0  ;;  %v983_v6 = vld [vmem:[%s1567_s4] ss:$0 sm:$0xff]  ;;  %s1302_s4 = smov 112   ;;  %v1155_v24 = vld [vmem:[%s1568_s5 + $0x8] sm:$0xff]   ;;  %vm360_vm4 = vcmask 1043456  }
  0x4c   :  { %1050 = vmatpush3.bf16.msra.mxu1 %v1149_v1  ;;  %1042 = vmatpush3.bf16.msra.mxu0 %v1151_v3  ;;  %v978_v8 = vld [vmem:[%s1565_s2] ss:$0 sm:$0xff] }
  0x4d   :  { %1051 = vmatprep.subr.bf16.mxu1 %v1300_v0  ;;  %1043 = vmatprep.subr.bf16.mxu0 %v1300_v0  ;;  %v1154_v23 = vld [vmem:[%s1568_s5] sm:$0xff]  }
  0x4e   :  { %v987_v43 = vld [vmem:[%s1569_s6] ss:$0 sm:$0xff] }
  0x50   :  { %1052 = vmatpush3.bf16.msra.mxu1 %v1150_v2  ;;  %1044 = vmatpush3.bf16.msra.mxu0 %v1153_v4  ;;  %v1157_v2 = vld [vmem:[#allocation8 + $0x8] sm:$0xff]  }
  0x51   :  { %1065 = vmatprep.subr.bf16.mxu1 %v1300_v0  ;;  %1057 = vmatprep.subr.bf16.mxu0 %v1300_v0 }
  0x53   :  { %1054 = vmatmul.mubr.msk.bf16.vlgmr.msra.gmra.mrb[0].mxu1 %vm119_vm1, %v1152_v5  ;;  %1046 = vmatmul.mubr.msk.bf16.vlgmr.msra.gmra.mrb[0].mxu0 %vm119_vm1, %v1152_v5 }
  0x54   :  { %1067 = vmatprep.mubr.msk.bf16.mxu1 %vm1301_vm0, %v1300_v0  ;;  %1061 = vmatprep.mubr.msk.bf16.mxu0 %vm1301_vm0, %v1300_v0 }
  0x55   :  { %1058 = vmatpush3.bf16.msra.mxu0 %v1154_v23 }
  0x56   :  { %1059 = vmatprep.subr.bf16.mxu0 %v1300_v0 }
  0x59   :  { %1060 = vmatpush3.bf16.msra.mxu0 %v1155_v24 }
  0x5a   :  { %1071 = vmatprep.subr.bf16.mxu0 %v1300_v0 }
  0x5c   :  { %1062 = vmatmul.mubr.msk.bf16.vlgmr.msra.gmra.mrb[4].mxu0 %vm119_vm1, %v1152_v5 }
  0x5d   :  { %1073 = vmatprep.mubr.msk.bf16.mxu0 %vm1301_vm0, %v1300_v0 }
 0x126   :  { %v221_v7 = vpop.f32.mrb[0].mxu1  ;;  %v157_v12 = vpop.f32.mrb[0].mxu0 }
 0x127   :  { %v222_v9 = vadd.f32 %v983_v6, %v221_v7  ;;  %v1055_v10 = vpop.f32.mrb[1].mxu1  ;;  %v158_v16 = vadd.f32 %v978_v8, %v157_v12  ;;  %v1047_v17 = vpop.f32.mrb[1].mxu0 }
 0x128   :  { %v224_v11 = vpop.f32.mrb[2].mxu1  ;;  %v160_v18 = vpop.f32.mrb[2].mxu0 }
 0x129   :  { %v294_v13 = vpack.c.bf16 %v222_v9, %v222_v9  ;;  %v1452_v14 = vadd.f32 %v983_v6, %v224_v11  ;;  %v1056_v15 = vpop.f32.mrb[3].mxu1  ;;  %v293_v20 = vpack.c.bf16 %v158_v16, %v158_v16  ;;  %v1456_v21 = vadd.f32 %v978_v8, %v160_v18  ;;  %v1048_v22 = vpop.f32.mrb[3].mxu0  ;;  %v1156_v8 = vld [vmem:[#allocation8] sm:$0xff]  }
 0x12b   :  { %v301_v19 = vsel %vm296_vm2, %v294_v13, 0  ;;  %411 = vrot.lane.b32.xlu0 %v294_v13, %s1302_s4  ;;  %v632_v59 = vpack.c.bf16 %v1452_v14, %v1452_v14  ;;  %v631_v60 = vpack.c.bf16 %v1456_v21, %v1456_v21 }
 0x12c   :  { %1066 = vmatpush3.bf16.xpose.msra.mxu1 %v301_v19 }
 0x12d   :  { %1077 = vmatprep.subr.bf16.mxu1 %v1300_v0  ;;  %v638_v21 = vsel %vm296_vm2, %v632_v59, 0 }
 0x12f   :  { %408 = vrot.lane.b32.xlu0 %v293_v20, %s1302_s4  ;;  %v285_v44 = vpop.f32.mrb[4].mxu0 }
 0x130   :  { %v286_v45 = vadd.f32 %v987_v43, %v285_v44  ;;  %v1063_v46 = vpop.f32.mrb[5].mxu0 }
 0x131   :  { %v288_v51 = vpop.f32.mrb[6].mxu0 }
 0x132   :  { %v295_v47 = vpack.c.bf16 %v286_v45, %v286_v45  ;;  %v1064_v52 = vpop.f32.mrb[7].mxu0  ;;  %v289_v53 = vadd.f32 %v987_v43, %v288_v51 }
 0x133   :  { %1068 = vmatmul.mubr.msk.bf16.vlgmr.msra.gmra.mrb[4].mxu1 %vm296_vm2, %v293_v20 }
 0x134   :  { %1079 = vmatprep.mubr.msk.bf16.mxu1 %vm1301_vm0, %v1300_v0  ;;  %v362_v48 = vsel %vm360_vm4, %v295_v47, 0  ;;  %v1505_v10 = vpack.c.bf16 %v289_v53, %v289_v53 }
 0x135   :  { %1072 = vmatpush3.bf16.msra.mxu0 %v362_v48 }
 0x136   :  { %1083 = vmatprep.subr.bf16.mxu0 %v1300_v0  ;;  %v697_v15 = vsel %vm360_vm4, %v1505_v10, 0 }
 0x19d   :  { %v412_v25 = vpop.permute.xlu0 %411 }
 0x19e   :  { %v417_v26 = vsel %vm296_vm2, %v412_v25, 0 }
 0x19f   :  { %1078 = vmatpush3.bf16.xpose.msra.mxu1 %v417_v26 }
 0x1a0   :  { %1089 = vmatprep.subr.bf16.mxu1 %v1300_v0 }
 0x1a1   :  { %v409_v27 = vpop.permute.xlu0 %408 }
 0x1a6   :  { %1080 = vmatmul.mubr.msk.bf16.vlgmr.msra.gmra.mrb[8].mxu1 %vm296_vm2, %v409_v27 }
 0x1a7   :  { %1091 = vmatprep.mubr.msk.bf16.mxu1 %vm1301_vm0, %v1300_v0  ;;  %1090 = vmatpush3.bf16.msra.mxu1 %v1157_v2 }
 0x1a8   :  { %1101 = vmatprep.subr.bf16.mxu1 %v1300_v0 }
 0x206   :  { %v337_v28 = vpop.f32.mrb[4].mxu1 }
 0x207   :  { %v343_v29 = vmul.f32 0.0625, %v337_v28  ;;  %v1069_v30 = vpop.f32.mrb[5].mxu1 }
 0x208   :  { %v340_v31 = vpop.f32.mrb[6].mxu1  ;;  %v1529_v30 = vld [vmem:[%s1571_s8] ss:$0 sm:$0xff]  ;;  %s1303_s8 = smov [#allocation10]  }
 0x209   :  { %v1070_v32 = vpop.f32.mrb[7].mxu1  ;;  %v345_v33 = vsel %vm344_vm3, %v343_v29, -inf  ;;  %s964_s24 = sshll.u32 %s1303_s8, 4  ;;  %s965_s24 = int_to_ptr.vmem [resolvable:$true] %s964_s24 }
 0x20a   :  { %346 = vmax.xlane.f32.xlu1 %v345_v33  ;;  %s1264_s25 = scalar_lea.vmem %s965_s24, 256  ;;  %p1269_p5 = scmp.lt.s32.totalorder %s965_s24, %s965_s24 }
 0x20b   :  { %p1265_p4 = scmp.ne.s32.totalorder %s965_s24, %s1264_s25  ;;  %p1270_p6 = scmp.lt.s32.totalorder %s1264_s25, %s1264_s25 }
 0x20d   :  { %p1271_p7 = por %p1270_p6, %p1269_p5 }
 0x20f   :  { %p1272_p8 = pnand %p1271_p7, %p1265_p4 }
 0x279   :  { %v453_v34 = vpop.f32.mrb[8].mxu1 }
 0x27a   :  { %v459_v35 = vmul.f32 0.0625, %v453_v34  ;;  %v1081_v36 = vpop.f32.mrb[9].mxu1 }
 0x27b   :  { %v456_v37 = vpop.f32.mrb[10].mxu1 }
 0x27c   :  { %v1082_v38 = vpop.f32.mrb[11].mxu1  ;;  %v460_v39 = vsel %vm344_vm3, %v459_v35, -inf }
 0x27d   :  { %461 = vmax.xlane.f32.xlu1 %v460_v39 }
 0x297   :  { %v347_v40 = vpop.xlane.xlu1 %346 }
 0x298   :  { %v348_v41 = vsub.f32 %v343_v29, %v347_v40 }
 0x29a   :  { %v349_v42 = vmul.f32 1.442695, %v348_v41 }
 0x29c   :  { %1160 = vpow2.f32 %v349_v42 }
 0x2a6   :  { %v1161_v49 = vpop.eup %1160 }
 0x2a7   :  { %v351_v50 = vsel %vm344_vm3, %v1161_v49, 0.0 }
 0x2a8   :  { %352 = vadd.xlane.f32.xlu0 %v351_v50 }
 0x30a   :  { %v462_v54 = vpop.xlane.xlu1 %461 }
 0x30b   :  { %v463_v55 = vsub.f32 %v459_v35, %v462_v54 }
 0x30d   :  { %v464_v56 = vmul.f32 1.442695, %v463_v55 }
 0x30f   :  { %1162 = vpow2.f32 %v464_v56 }
 0x319   :  { %v1163_v57 = vpop.eup %1162 }
 0x31a   :  { %v466_v58 = vsel %vm344_vm3, %v1163_v57, 0.0 }
 0x31b   :  { %467 = vadd.xlane.f32.xlu1 %v466_v58 }
 0x32c   :  { %473 = vrot.lane.b32.xlu1 %v295_v47, %s1302_s4 }
 0x330   :  { %746 = vrot.lane.b32.xlu1 %v632_v59, %s1302_s4 }
 0x334   :  { %743 = vrot.lane.b32.xlu1 %v631_v60, %s1302_s4 }
 0x335   :  { %v353_v61 = vpop.xlane.xlu0 %352 }
 0x336   :  { %1164 = vrcp.f32 %v353_v61 }
 0x340   :  { %v1165_v62 = vpop.eup %1164 }
 0x341   :  { %v355_v63 = vmul.f32 %v1165_v62, %v1161_v49 }
 0x343   :  { %v356_v1 = vpack.c.bf16 %v355_v63, %v355_v63 }
 0x345   :  { %1074 = vmatmul.mubr.msk.bf16.vlgmr.msra.gmra.mrb[8].mxu0 %vm344_vm3, %v356_v1 }
 0x346   :  { %1085 = vmatprep.mubr.msk.bf16.mxu0 %vm1301_vm0, %v1300_v0 }
 0x3a8   :  { %v468_v3 = vpop.xlane.xlu1 %467 }
 0x3a9   :  { %1166 = vrcp.f32 %v468_v3 }
 0x3ac   :  { %v474_v4 = vpop.permute.xlu1 %473 }
 0x3ad   :  { %v479_v5 = vsel %vm360_vm4, %v474_v4, 0 }
 0x3ae   :  { %1084 = vmatpush3.bf16.msra.mxu0 %v479_v5 }
 0x3af   :  { %1095 = vmatprep.subr.bf16.mxu0 %v1300_v0 }
 0x3b0   :  { %v747_v23 = vpop.permute.xlu1 %746 }
 0x3b1   :  { %v752_v24 = vsel %vm296_vm2, %v747_v23, 0 }
 0x3b3   :  { %v1167_v6 = vpop.eup %1166 }
 0x3b4   :  { %v470_v7 = vmul.f32 %v1167_v6, %v1163_v57  ;;  %v744_v25 = vpop.permute.xlu1 %743  ;;  %v1158_v6 = vld [vmem:[#allocation8] sm:$0xff]  }
 0x3b6   :  { %v471_v9 = vpack.c.bf16 %v470_v7, %v470_v7  ;;  %v1159_v7 = vld [vmem:[#allocation8 + $0x8] sm:$0xff]  }
 0x3b8   :  { %1086 = vmatmul.mubr.msk.bf16.vlgmr.msra.gmra.mrb[12].mxu0 %vm344_vm3, %v471_v9 }
 0x3b9   :  { %1096 = vmatpush3.bf16.msra.mxu0 %v1156_v8  ;;  %1097 = vmatprep.mubr.msk.bf16.mxu0 %vm1301_vm0, %v1300_v0 }
 0x3ba   :  { %1107 = vmatprep.subr.bf16.mxu0 %v1300_v0 }
 0x418   :  { %v398_v11 = vpop.f32.mrb[8].mxu0 }
 0x419   :  { %v404_v12 = vpack.c.bf16 %v398_v11, %v398_v11  ;;  %v1075_v13 = vpop.f32.mrb[9].mxu0 }
 0x41a   :  { %v401_v14 = vpop.f32.mrb[10].mxu0 }
 0x41b   :  { %v1076_v16 = vpop.f32.mrb[11].mxu0  ;;  %1098 = vmatmul.mubr.msk.bf16.vlgmr.msra.gmra.mrb[16].mxu0 %vm296_vm2, %v404_v12 }
 0x41c   :  { %1108 = vmatpush3.bf16.msra.mxu0 %v697_v15  ;;  %1109 = vmatprep.mubr.msk.bf16.mxu0 %vm1301_vm0, %v1300_v0 }
 0x41d   :  { %1119 = vmatprep.subr.bf16.mxu0 %v1300_v0 }
 0x48b   :  { %v515_v17 = vpop.f32.mrb[12].mxu0 }
 0x48c   :  { %v521_v18 = vpack.c.bf16 %v515_v17, %v515_v17  ;;  %v1087_v19 = vpop.f32.mrb[13].mxu0 }
 0x48d   :  { %v518_v20 = vpop.f32.mrb[14].mxu0 }
 0x48e   :  { %v1088_v22 = vpop.f32.mrb[15].mxu0  ;;  %1092 = vmatmul.mubr.msk.bf16.vlgmr.msra.gmra.mrb[12].mxu1 %vm296_vm2, %v521_v18 }
 0x48f   :  { %1102 = vmatpush3.bf16.xpose.msra.mxu1 %v638_v21  ;;  %1103 = vmatprep.mubr.msk.bf16.mxu1 %vm1301_vm0, %v1300_v0 }
 0x490   :  { %1113 = vmatprep.subr.bf16.mxu1 %v1300_v0 }
 0x496   :  { %1104 = vmatmul.mubr.msk.bf16.vlgmr.msra.gmra.mrb[16].mxu1 %vm296_vm2, %v631_v60 }
 0x497   :  { %1114 = vmatpush3.bf16.xpose.msra.mxu1 %v752_v24  ;;  %1115 = vmatprep.mubr.msk.bf16.mxu1 %vm1301_vm0, %v1300_v0 }
 0x498   :  { %1125 = vmatprep.subr.bf16.mxu1 %v1300_v0 }
 0x49e   :  { %1116 = vmatmul.mubr.msk.bf16.vlgmr.msra.gmra.mrb[20].mxu1 %vm296_vm2, %v744_v25 }
 0x49f   :  { %1127 = vmatprep.mubr.msk.bf16.mxu1 %vm1301_vm0, %v1300_v0  ;;  %1126 = vmatpush3.bf16.msra.mxu1 %v1159_v7 }
 0x4ee   :  { %v617_v26 = vpop.f32.mrb[16].mxu0 }
 0x4ef   :  { %v1099_v27 = vpop.f32.mrb[17].mxu0 }
 0x4f0   :  { %v620_v28 = vpop.f32.mrb[18].mxu0 }
 0x4f1   :  { %v1100_v29 = vpop.f32.mrb[19].mxu0 }
 0x561   :  { %v568_v31 = vpop.f32.mrb[12].mxu1 }
 0x562   :  { %v618_v32 = vadd.f32 %v617_v26, %v568_v31  ;;  %v1093_v33 = vpop.f32.mrb[13].mxu1 }
 0x563   :  { %v571_v34 = vpop.f32.mrb[14].mxu1 }
 0x564   :  { %v629_v35 = vadd.f32 %v1529_v30, %v618_v32  ;;  %v1094_v36 = vpop.f32.mrb[15].mxu1 }
 0x566   :  { %630 = vst.msk [vmem:[#allocation10] sm:$0xff] %vm119_vm1, %v629_v35 }
 0x569   :  { %v674_v37 = vpop.f32.mrb[16].mxu1 }
 0x56a   :  { %v680_v38 = vmul.f32 0.0625, %v674_v37  ;;  %v1105_v39 = vpop.f32.mrb[17].mxu1 }
 0x56b   :  { %v677_v40 = vpop.f32.mrb[18].mxu1 }
 0x56c   :  { %v1106_v41 = vpop.f32.mrb[19].mxu1  ;;  %v681_v42 = vsel %vm344_vm3, %v680_v38, -inf }
 0x56d   :  { %682 = vmax.xlane.f32.xlu1 %v681_v42 }
 0x571   :  { %v788_v43 = vpop.f32.mrb[20].mxu1 }
 0x572   :  { %v794_v44 = vmul.f32 0.0625, %v788_v43  ;;  %v1117_v45 = vpop.f32.mrb[21].mxu1 }
 0x573   :  { %v791_v46 = vpop.f32.mrb[22].mxu1 }
 0x574   :  { %v1118_v47 = vpop.f32.mrb[23].mxu1  ;;  %v795_v48 = vsel %vm344_vm3, %v794_v44, -inf }
 0x575   :  { %796 = vmax.xlane.f32.xlu0 %v795_v48 }
 0x5fa   :  { %v683_v49 = vpop.xlane.xlu1 %682 }
 0x5fb   :  { %v684_v50 = vsub.f32 %v680_v38, %v683_v49 }
 0x5fd   :  { %v685_v51 = vmul.f32 1.442695, %v684_v50 }
 0x5ff   :  { %1168 = vpow2.f32 %v685_v51 }
 0x602   :  { %v797_v52 = vpop.xlane.xlu0 %796 }
 0x603   :  { %v798_v53 = vsub.f32 %v794_v44, %v797_v52 }
 0x605   :  { %v799_v54 = vmul.f32 1.442695, %v798_v53 }
 0x607   :  { %1170 = vpow2.f32 %v799_v54 }
 0x609   :  { %v1169_v55 = vpop.eup %1168 }
 0x60a   :  { %v687_v56 = vsel %vm344_vm3, %v1169_v55, 0.0 }
 0x60b   :  { %688 = vadd.xlane.f32.xlu0 %v687_v56 }
 0x611   :  { %v1171_v57 = vpop.eup %1170 }
 0x612   :  { %v801_v58 = vsel %vm344_vm3, %v1171_v57, 0.0 }
 0x613   :  { %802 = vadd.xlane.f32.xlu0 %v801_v58 }
 0x629   :  { %808 = vrot.lane.b32.xlu0 %v1505_v10, %s1302_s4 }
 0x698   :  { %v689_v59 = vpop.xlane.xlu0 %688 }
 0x699   :  { %1172 = vrcp.f32 %v689_v59 }
 0x6a0   :  { %v803_v60 = vpop.xlane.xlu0 %802 }
 0x6a1   :  { %1174 = vrcp.f32 %v803_v60 }
 0x6a3   :  { %v1173_v61 = vpop.eup %1172 }
 0x6a4   :  { %v691_v62 = vmul.f32 %v1173_v61, %v1169_v55  ;;  %v809_v63 = vpop.permute.xlu0 %808 }
 0x6a5   :  { %v814_v2 = vsel %vm360_vm4, %v809_v63, 0 }
 0x6a6   :  { %v692_v1 = vpack.c.bf16 %v691_v62, %v691_v62 }
 0x6a8   :  { %1110 = vmatmul.mubr.msk.bf16.vlgmr.msra.gmra.mrb[20].mxu0 %vm344_vm3, %v692_v1 }
 0x6a9   :  { %1120 = vmatpush3.bf16.msra.mxu0 %v814_v2  ;;  %1121 = vmatprep.mubr.msk.bf16.mxu0 %vm1301_vm0, %v1300_v0 }
 0x6aa   :  { %1131 = vmatprep.subr.bf16.mxu0 %v1300_v0 }
 0x6ab   :  { %v1175_v3 = vpop.eup %1174 }
 0x6ac   :  { %v805_v4 = vmul.f32 %v1175_v3, %v1171_v57 }
 0x6ae   :  { %v806_v5 = vpack.c.bf16 %v805_v4, %v805_v4 }
 0x6b0   :  { %1122 = vmatmul.mubr.msk.bf16.vlgmr.msra.gmra.mrb[24].mxu0 %vm344_vm3, %v806_v5 }
 0x6b1   :  { %1133 = vmatprep.mubr.msk.bf16.mxu0 %vm1301_vm0, %v1300_v0  ;;  %1132 = vmatpush3.bf16.msra.mxu0 %v1158_v6 }
 0x77b   :  { %v733_v8 = vpop.f32.mrb[20].mxu0 }
 0x77c   :  { %v739_v9 = vpack.c.bf16 %v733_v8, %v733_v8  ;;  %v1111_v10 = vpop.f32.mrb[21].mxu0 }
 0x77d   :  { %v736_v11 = vpop.f32.mrb[22].mxu0 }
 0x77e   :  { %v1112_v12 = vpop.f32.mrb[23].mxu0  ;;  %1134 = vmatmul.mubr.msk.bf16.vlgmr.msra.gmra.mrb[28].mxu0 %vm296_vm2, %v739_v9 }
 0x783   :  { %v850_v13 = vpop.f32.mrb[24].mxu0 }
 0x784   :  { %v856_v14 = vpack.c.bf16 %v850_v13, %v850_v13  ;;  %v1123_v15 = vpop.f32.mrb[25].mxu0 }
 0x785   :  { %v853_v16 = vpop.f32.mrb[26].mxu0 }
 0x786   :  { %v1124_v17 = vpop.f32.mrb[27].mxu0  ;;  %1128 = vmatmul.mubr.msk.bf16.vlgmr.msra.gmra.mrb[24].mxu1 %vm296_vm2, %v856_v14 }
 0x851   :  { %v951_v18 = vpop.f32.mrb[28].mxu0 }
 0x852   :  { %v1135_v0 = vpop.f32.mrb[29].mxu0 }
 0x853   :  { %v954_v19 = vpop.f32.mrb[30].mxu0 }
 0x854   :  { %v1136_v20 = vpop.f32.mrb[31].mxu0 }
 0x859   :  { %v902_v21 = vpop.f32.mrb[24].mxu1 }
 0x85a   :  { %v952_v22 = vadd.f32 %v951_v18, %v902_v21  ;;  %v1129_v23 = vpop.f32.mrb[25].mxu1 }
 0x85b   :  { %v905_v24 = vpop.f32.mrb[26].mxu1 }
 0x85c   :  { %v957_v25 = vadd.f32 %v1529_v30, %v952_v22  ;;  %v1130_v26 = vpop.f32.mrb[27].mxu1 }
 0x85e   :  { %958 = vst.msk [vmem:[#allocation10 + $0x8] sm:$0xff] %vm119_vm1, %v957_v25 }
 0x85f   :  { %1275 = shalt.err (!%p1272_p8)
}
 0x860   :  { %s1276_s12 = scalar_lea.hbm %s1572_s9, 256 }
 0x861   :  { %p1277_p9 = scmp.ne.s32.totalorder %s1572_s9, %s1276_s12  ;;  %p1280_p10 = scmp.lt.u32.totalorder %s1276_s12, %s1572_s9 }
 0x863   :  { %p1282_p11 = pnand %p1280_p10, %p1277_p9 }
 0x865   :  { %1285 = shalt.err (!%p1282_p11)
}
 0x866   :  { %s1304_s11 = smov 128   ;;  %s1305_s13 = smov 8  }
 0x867   :  { %970 = dma.vmem_to_hbm [thread:$0]  %s965_s24, 256, %s1572_s9, [#allocation4], %s1304_s11, %s1304_s11, %s1305_s13  }
 0x868   :  { %1292 = dma.done.wait [#allocation4], 256  }
 0x869   :  { %1293 = vsyncadd [#allocation4], 4294967040 }
 0x86a   :  { %974 = vsyncpa [#allocation3], 1 }
 0x86b   :  { %975 = vsyncpa [#allocation6], 1 }
 0x86c   :  { %976 = vsyncpa [#allocation9], 1 }
 0x86d   :  { %977 = vsyncpa [#allocation4], 1 }

</bundles_post_ra>
